<compile_context>
chip_gen: v7x
topology: tpu7x:2x2x1
jax: 0.10.0
libtpu: 0.0.40
codegen_flags: <defaults>
</compile_context>

<pallas_src>
import functools

import jax
import jax.numpy as jnp
from jax.experimental import pallas as pl
from jax.experimental.pallas import tpu as pltpu

_MIB = 1024 * 1024


def _round_up(x, m):
    return (x + m - 1) // m * m


def _vmem_budgets():
    """(stream_budget_bytes, vmem_limit_bytes) sized per TPU generation."""
    vmem_cap = None
    try:
        info = pltpu.get_tpu_info()
        vmem_cap = getattr(info, "vmem_capacity_bytes", None)
    except Exception:  # pragma: no cover - conservative fallback off-TPU
        vmem_cap = None
    if vmem_cap is None:
        # Safe on every generation (v7x physical VMEM is 64 MiB).
        return 24 * _MIB, 48 * _MIB
    if vmem_cap >= 100 * _MIB:
        # v5e / v6e: 128 MiB physical VMEM -> big row tiles.
        return 56 * _MIB, 96 * _MIB
    # v7x: 64 MiB physical VMEM.
    return 36 * _MIB, 48 * _MIB


def _lora_kernel(x_ref, down_ref, up_ref, o_ref, *, eff_scale, matmul_dtype):
    x = x_ref[...]
    # (TM, D) @ (D, R) -> (TM, R), f32 accumulation on the MXU.
    tmp = jnp.dot(x.astype(matmul_dtype), down_ref[...].astype(matmul_dtype),
                  preferred_element_type=jnp.float32)
    # Apply alpha / rank**2 to the tiny f32 intermediate (VPU, hidden under DMA).
    tmp = tmp * eff_scale
    # (TM, R) @ (R, D) -> (TM, D), f32 accumulation.
    lora = jnp.dot(tmp.astype(matmul_dtype), up_ref[...].astype(matmul_dtype),
                   preferred_element_type=jnp.float32)
    # Residual add in f32, single store of the final dtype (lane-dense: full D).
    o_ref[...] = (x.astype(jnp.float32) + lora).astype(o_ref.dtype)


def lora_forward(hidden_states, lora_down, lora_up, *, lora_alpha,
                 block_rows=1024, use_bf16_matmul_on_f32=False):
    """hidden_states: (B, S, D); lora_down: (D, R); lora_up: (R, D)."""
    B, S, D = hidden_states.shape
    D2, R = lora_down.shape
    assert D2 == D and lora_up.shape == (R, D)
    rank = R
    scaling = lora_alpha / rank          # as in the PyTorch module
    eff_scale = scaling / rank           # module applies scaling * (.../rank)

    dtype = hidden_states.dtype
    dtype_bytes = jnp.dtype(dtype).itemsize
    sublane = max(8, 32 // dtype_bytes)  # 8 (f32), 16 (bf16), 32 (int8/fp8)

    matmul_dtype = dtype
    if use_bf16_matmul_on_f32 and dtype == jnp.float32:
        # Mainly for v5e, whose f32 MXU throughput is far below its bf16 peak.
        matmul_dtype = jnp.bfloat16

    # ---- row tiling sized against a generation-aware scoped-VMEM budget ----
    M = B * S
    x2d = hidden_states.reshape(M, D)    # metadata-only reshape, no HBM copy

    stream_budget, vmem_limit = _vmem_budgets()
    w_bytes = jnp.dtype(lora_down.dtype).itemsize
    weight_vmem = 2 * 2 * D * R * w_bytes          # two weights, double-buffered
    avail = max(stream_budget - weight_vmem, 4 * sublane * D * dtype_bytes)
    # 4 streamed (TM, D) tiles: double-buffered input + double-buffered output.
    max_tm_vmem = avail // (4 * D * dtype_bytes)
    TM = max(sublane, (min(block_rows, max_tm_vmem) // sublane) * sublane)
    TM = min(TM, _round_up(M, sublane))
    # Target >= 4 grid steps when rows allow it: >= 2 steps per v7x TensorCore
    # (grid is sharded across cores via the "parallel" axis), so each core
    # keeps DMA/compute overlap; on single-core parts it just deepens the pipe.
    if pl.cdiv(M, TM) < 4 and M > sublane:
        TM = max(sublane, min(TM, _round_up(pl.cdiv(M, 4), sublane)))
    grid = (pl.cdiv(M, TM),)

    cost = pl.CostEstimate(
        flops=4 * M * D * R,
        transcendentals=0,
        bytes_accessed=2 * M * D * dtype_bytes + 2 * D * R * w_bytes,
    )

    kernel = functools.partial(_lora_kernel, eff_scale=eff_scale,
                               matmul_dtype=matmul_dtype)

    out2d = pl.pallas_call(
        kernel,
        out_shape=jax.ShapeDtypeStruct((M, D), dtype),
        grid_spec=pltpu.PrefetchScalarGridSpec(
            num_scalar_prefetch=0,
            grid=grid,
            in_specs=[
                pl.BlockSpec((TM, D), lambda i: (i, 0)),   # hidden row tile
                pl.BlockSpec((D, R), lambda i: (0, 0)),    # lora_down (whole, un-padded)
                pl.BlockSpec((R, D), lambda i: (0, 0)),    # lora_up (whole, un-padded)
            ],
            out_specs=pl.BlockSpec((TM, D), lambda i: (i, 0)),
        ),
        compiler_params=pltpu.CompilerParams(
            dimension_semantics=("parallel",),
            vmem_limit_bytes=vmem_limit,
        ),
        cost_estimate=cost,
    )(x2d, lora_down, lora_up)

    return out2d.reshape(B, S, D)        # metadata-only reshape, no HBM copy


def lora_reference(hidden_states, lora_down, lora_up, *, lora_alpha):
    rank = lora_down.shape[1]
    scaling = lora_alpha / rank
    w = lora_down @ lora_up                                     # (D, D)
    lora_out = jnp.einsum('ij,bsi->bsj', w, hidden_states) / rank
    return hidden_states + scaling * lora_out


if __name__ == "__main__":
    # Small shapes consistent with the module: batch=2, seq=8, dim=32, rank=4.
    B, S, D = 2, 8, 32
    rank = 4
    lora_alpha = 8.0

    key = jax.random.PRNGKey(0)
    k_x, k_down, k_up = jax.random.split(key, 3)

    hidden = jax.random.normal(k_x, (B, S, D), dtype=jnp.float32)

    # Deterministic init matching LoRA.__init__: lora_down ~ randn, lora_up = zeros.
    lora_down = jax.random.normal(k_down, (D, rank), dtype=jnp.float32)
    lora_up = jnp.zeros((rank, D), dtype=jnp.float32)

    out = lora_forward(hidden, lora_down, lora_up, lora_alpha=lora_alpha)
    jax.block_until_ready(out)
    ref = lora_reference(hidden, lora_down, lora_up, lora_alpha=lora_alpha)
    assert jnp.allclose(out, ref, atol=1e-5, rtol=1e-5)

    # Non-zero lora_up so the LoRA path is actually exercised.
    lora_up_nz = 0.05 * jax.random.normal(k_up, (rank, D), dtype=jnp.float32)
    out2 = lora_forward(hidden, lora_down, lora_up_nz, lora_alpha=lora_alpha)
    jax.block_until_ready(out2)
    ref2 = lora_reference(hidden, lora_down, lora_up_nz, lora_alpha=lora_alpha)
    assert jnp.allclose(out2, ref2, atol=1e-4, rtol=1e-4)

    # bf16 path (covers the extra rounding of the (TM, R) intermediate noted in
    # the review); compare against an f32 reference built from the same
    # bf16-rounded inputs with a bf16-appropriate tolerance.
    hidden_bf = hidden.astype(jnp.bfloat16)
    down_bf = lora_down.astype(jnp.bfloat16)
    up_bf = lora_up_nz.astype(jnp.bfloat16)
    out3 = lora_forward(hidden_bf, down_bf, up_bf, lora_alpha=lora_alpha)
    jax.block_until_ready(out3)
    ref3 = lora_reference(hidden_bf.astype(jnp.float32),
                          down_bf.astype(jnp.float32),
                          up_bf.astype(jnp.float32), lora_alpha=lora_alpha)
    assert jnp.allclose(out3.astype(jnp.float32), ref3, atol=5e-2, rtol=5e-2)

    print("KERNEL_OK")
</pallas_src>

<mosaic_0001>
module attributes {stable_mosaic.version = 11 : i64} {
  func.func @_lora_kernel(%arg0: i32, %arg1: memref<8x32xf32, #tpu.memory_space<vmem>>, %arg2: memref<32x4xf32, #tpu.memory_space<vmem>>, %arg3: memref<4x32xf32, #tpu.memory_space<vmem>>, %arg4: memref<8x32xf32, #tpu.memory_space<vmem>>) attributes {dimension_semantics = [#tpu.dimension_semantics<parallel>], iteration_bounds = array<i64: 2>, scalar_prefetch = 0 : i64, scratch_operands = 0 : i64, tpu.core_type = #tpu.core_type<tc>, window_params = [{transform_indices = @transform_0, window_bounds = array<i64: 8, 32>}, {pipeline_mode = #tpu.pipeline_mode<synchronous>, transform_indices = @transform_1, window_bounds = array<i64: 32, 4>}, {pipeline_mode = #tpu.pipeline_mode<synchronous>, transform_indices = @transform_2, window_bounds = array<i64: 4, 32>}, {transform_indices = @transform_3, window_bounds = array<i64: 8, 32>}]} {
    %c0 = arith.constant 0 : index
    %c0_0 = arith.constant 0 : index
    %0 = vector.load %arg1[%c0, %c0_0] : memref<8x32xf32, #tpu.memory_space<vmem>>, vector<8x32xf32>
    %c0_1 = arith.constant 0 : index
    %c0_2 = arith.constant 0 : index
    %1 = vector.load %arg2[%c0_1, %c0_2] : memref<32x4xf32, #tpu.memory_space<vmem>>, vector<32x4xf32>
    %cst = arith.constant dense<0.000000e+00> : vector<8x4xf32>
    %2 = tpu.matmul %0, %1, %cst {dimension_numbers = #tpu.dot_dimension_numbers<[1], [0], [0], [1], [0, 0, 1, 1], [], []>} : vector<8x32xf32>, vector<32x4xf32>, vector<8x4xf32> -> vector<8x4xf32>
    %cst_3 = arith.constant 5.000000e-01 : f32
    %3 = vector.broadcast %cst_3 : f32 to vector<8x4xf32>
    %4 = arith.mulf %2, %3 : vector<8x4xf32>
    %c0_4 = arith.constant 0 : index
    %c0_5 = arith.constant 0 : index
    %5 = vector.load %arg3[%c0_4, %c0_5] : memref<4x32xf32, #tpu.memory_space<vmem>>, vector<4x32xf32>
    %cst_6 = arith.constant dense<0.000000e+00> : vector<8x32xf32>
    %6 = tpu.matmul %4, %5, %cst_6 {dimension_numbers = #tpu.dot_dimension_numbers<[1], [0], [0], [1], [0, 0, 1, 1], [], []>} : vector<8x4xf32>, vector<4x32xf32>, vector<8x32xf32> -> vector<8x32xf32>
    %7 = arith.addf %0, %6 : vector<8x32xf32>
    %c0_7 = arith.constant 0 : index
    %c0_8 = arith.constant 0 : index
    %8 = vector.load %arg4[%c0_7, %c0_8] : memref<8x32xf32, #tpu.memory_space<vmem>>, vector<8x32xf32>
    tpu.vector_store %arg4[%c0_7, %c0_8], %7 {strides = array<i32>} : memref<8x32xf32, #tpu.memory_space<vmem>>, vector<8x32xf32>,
    return
  }
  func.func @transform_0(%arg0: i32) -> (i32, i32) {
    %c0_i32 = arith.constant 0 : i32
    %c0_i32_0 = arith.constant 0 : i32
    return %arg0, %c0_i32 : i32, i32
  }
  func.func @transform_1(%arg0: i32) -> (i32, i32) {
    %c0_i32 = arith.constant 0 : i32
    %c0_i32_0 = arith.constant 0 : i32
    %c0_i32_1 = arith.constant 0 : i32
    return %c0_i32, %c0_i32_0 : i32, i32
  }
  func.func @transform_2(%arg0: i32) -> (i32, i32) {
    %c0_i32 = arith.constant 0 : i32
    %c0_i32_0 = arith.constant 0 : i32
    %c0_i32_1 = arith.constant 0 : i32
    return %c0_i32, %c0_i32_0 : i32, i32
  }
  func.func @transform_3(%arg0: i32) -> (i32, i32) {
    %c0_i32 = arith.constant 0 : i32
    %c0_i32_0 = arith.constant 0 : i32
    return %arg0, %c0_i32 : i32, i32
  }
}

</mosaic_0001>

<bundles_post_ra>
// kernel: tpu_custom_call.1
= control target key start
LH: loop header
LB: loop body
LE: loop exit
PB: predicated region body
PF: predicated region fallthrough
CT: control target
= control target key end

     0   :  { %8 = vsyncpa [#allocation3], 0  ;;  %s689_s0 = inlined_call_operand.vmem [shape: f32[16,32], index: 0, kind: input, shape index: {}]   ;;  %s690_s1 = inlined_call_operand.vmem [shape: f32[32,4], index: 1, kind: input, shape index: {}]   ;;  %s691_s2 = inlined_call_operand.vmem [shape: f32[4,32], index: 2, kind: input, shape index: {}]   ;;  %s692_s3 = inlined_call_operand.hbm [shape: f32[16,32], index: 3, kind: output, shape index: {}]  }
   0x1   :  { %10 = vsyncpa [#allocation3 + $0x1], 0  ;;  %s572_s12 = smov 0   ;;  %s574_s13 = smov 0  }
   0x2   :  { %s576_s14 = smov 0   ;;  %s578_s15 = smov 0  }
   0x3 LB: > { %s593_s16 = sadd.s32 4294967295, %s546_s15   ;;  %s400_s17 = sadd.s32 4294967294, %s546_s15   ;;  %s546_s15 = sphi %s578_s15, %s698_s15   ;;  %s542_s14 = sphi %s576_s14, %s697_s14   ;;  %s538_s13 = sphi %s574_s13, %s696_s13   ;;  %s534_s12 = sphi %s572_s12, %s695_s12  }
   0x4   : > { %s597_s18 = sadd.s32 1, %s546_s15   ;;  %s91_s19 = sadd.s32 1, %s542_s14 }
   0x5   : > { %s88_s20 = ssub.s32 %s546_s15, %s597_s18  ;;  %p101_p0 = scmp.ne.s32.totalorder %s542_s14, %s538_s13 }
   0x6   : > { %p89_p1 = scmp.eq.s32.totalorder %s88_s20, 0  ;;  %p102_p2 = scmp.eq.s32.totalorder %s593_s16, 1 }
   0x7   : > { %p107_p3 = scmp.ne.s32.totalorder %s538_s13, %s534_s12  ;;  %p108_p4 = scmp.eq.s32.totalorder %s400_s17, 1 }
   0x8   : > { %s608_s21 = scalar_select %p89_p1, %s542_s14, %s91_s19  }
   0x9   : > { %p610_p5 = por %p102_p2, %p101_p0  ;;  %p614_p6 = por %p108_p4, %p107_p3 }
   0xa   : > { %p403_p7 = scmp.ge.s32.totalorder %s546_s15, 1  ;;  %p139_p8 = scmp.lt.s32.totalorder %s546_s15, 3 }
   0xc   : > { %p140_p9 = pnand %p403_p7, %p139_p8 }
   0xd   : > { %v167_v0 = vld [vmem:[%s690_s1] sm:$0xff] (!%p140_p9)  ;;  %v168_v1 = vld [vmem:[%s690_s1 + $0x8] sm:$0xff] (!%p140_p9)  ;;  %v169_v2 = vld [vmem:[%s690_s1 + $0x10] sm:$0xff] (!%p140_p9)  ;;  %v548_v3 = vmov (!%p140_p9), 0.0|0.0   ;;  %vm549_vm0 = vmmov (!%p140_p9), 0   ;;  %v550_v6 = vmov (!%p140_p9), 0.0  }
   0xe   : > { %143 = sbr.rel (%p140_p9) target bundleno = 468 (0x1d4), region = 32  ;;  %436 = vmatprep.subr.bf16.mxu0 (!%p140_p9), %v548_v3  ;;  %v437_v4 = vpack.c.bf16 (!%p140_p9), %v168_v1, %v167_v0  ;;  %v170_v5 = vld [vmem:[%s690_s1 + $0x18] sm:$0xff] (!%p140_p9)  ;;  %428 = vmatprep.mubr.msk.f32.mxu0 (!%p140_p9), %vm549_vm0, %v550_v6  ;;  %p162_p10 = scmp.lt.s32.totalorder (!%p140_p9), %s593_s16, 1  ;;  %vm171_vm1 = vcmask (!%p140_p9), 261120   ;;  %v246_v9 = vld [vmem:[%s691_s2] sm:$0xf] (!%p140_p9) }
   0xf   : > { %431 = vmatprep.subr.mxu1 (!%p140_p9), %v550_v6  ;;  %433 = vmatprep.mubr.msk.f32.mxu1 (!%p140_p9), %vm549_vm0, %v550_v6  ;;  %v440_v7 = vpack.c.bf16 (!%p140_p9), %v170_v5, %v169_v2  ;;  %vm251_vm2 = vcmask (!%p140_p9), 1043456   ;;  %vm247_vm3 = vcmask (!%p140_p9), 31744   ;;  %s159_s17 = sand.u32 (!%p140_p9), 1, %s538_s13   ;;  %s410_s20 = sshll.u32 (!%p140_p9), %s593_s16, 7 }
  0x10   : > { %438 = vmatpush3.bf16.msra.mxu0 (!%p140_p9), %v437_v4  ;;  %432 = vmatpush3.msk.msra.mxu1 (!%p140_p9), %vm251_vm2, %v246_v9  ;;  %s404_s19 = sshll.u32 (!%p140_p9), %s159_s17, 3  ;;  %s646_s28 = scalar_lea.hbm (!%p140_p9), %s692_s3, %s410_s20 }
  0x11   : > { %439 = vmatprep.subr.bf16.mxu0 (!%p140_p9), %v548_v3  ;;  %s161_s24 = scalar_lea.vmem (!%p140_p9), [#allocation2], %s404_s19  ;;  %s328_s29 = scalar_lea.sflag (!%p140_p9), [#allocation3], %s159_s17 }
  0x12   : > { %s341_s25 = sshll.u32 (!%p140_p9), %s161_s24, 4  ;;  %s648_s25 = int_to_ptr.vmem [resolvable:$true] %s341_s25 }
  0x13   : > { %s484_s30 = scalar_lea.vmem (!%p140_p9), %s648_s25, 128 }
  0x14   : > { %441 = vmatpush3.bf16.msra.mxu0 (!%p140_p9), %v440_v7  ;;  %p485_p11 = scmp.ne.s32.totalorder (!%p140_p9), %s648_s25, %s484_s30 }
  0x15   : > { %s163_s5 = scalar_select %p162_p10, %s593_s16, 1 }
  0x16   : > { %p486_p12 = pnand %p485_p11, %p610_p5  ;;  %s551_s16 = smov [#allocation2]  }
  0x17   : > { %s405_s6 = sshll.u32 %s163_s5, 3  ;;  %s488_s4 = sshll.u32 %s551_s16, 4  ;;  %s489_s4 = int_to_ptr.vmem [resolvable:$false] %s488_s4 }
  0x18   : > { %s165_s9 = scalar_lea.vmem %s689_s0, %s405_s6  ;;  %p487_p13 = pneg %p486_p12 }
  0x19   : > { %v166_v8 = vld [vmem:[%s165_s9] sm:$0xff]  ;;  %s490_s5 = scalar_lea.vmem %s489_s4, 256  ;;  %p491_p0 = scmp.lt.s32.totalorder %s648_s25, %s489_s4 }
  0x1a   : > { %429 = vmatmul.mubr.msk.f32.vlgmr.msra.gmra.mrb[0].mxu0 %vm171_vm1, %v166_v8  ;;  %p492_p1 = scmp.lt.s32.totalorder %s490_s5, %s484_s30 }
  0x1c   : > { %p493_p2 = por %p492_p1, %p491_p0 }
  0x1e   : > { %p494_p3 = pnand %p493_p2, %p487_p13 }
  0xed   : > { %v241_v10 = vpop.f32.mrb[0].mxu0 }
  0xee   : > { %v245_v11 = vmul.f32 0.5, %v241_v10  ;;  %v430_v12 = vpop.f32.mrb[1].mxu0 }
  0xf0   : > { %434 = vmatmul.mubr.msk.f32.vlgmr.msra.gmra.mrb[0].mxu1 %vm247_vm3, %v245_v11 }
 0x1c3   : > { %v321_v13 = vpop.f32.mrb[0].mxu1 }
 0x1c4   : > { %v325_v14 = vadd.f32 %v321_v13, %v166_v8  ;;  %v435_v15 = vpop.f32.mrb[1].mxu1 }
 0x1c6   : > { %326 = vst.msk [vmem:[%s161_s24] sm:$0xff] %vm171_vm1, %v325_v14 }
 0x1c7   : > { %497 = shalt.err (!%p494_p3)
}
 0x1c8   : > { %s498_s6 = scalar_lea.hbm %s646_s28, 128  ;;  %s502_s9 = scalar_lea.hbm %s692_s3, 256 }
 0x1c9   : > { %p499_p4 = scmp.ne.s32.totalorder %s646_s28, %s498_s6  ;;  %p503_p9 = scmp.lt.u32.totalorder %s646_s28, %s692_s3 }
 0x1ca   : > { %p504_p10 = scmp.lt.u32.totalorder %s502_s9, %s498_s6  ;;  %p506_p12 = scmp.lt.u32.totalorder %s498_s6, %s646_s28 }
 0x1cb   : > { %p500_p7 = pnand %p499_p4, %p610_p5 }
 0x1cc   : > { %p505_p11 = por %p504_p10, %p503_p9 }
 0x1cd   : > { %p501_p8 = pneg %p500_p7 }
 0x1ce   : > { %p507_p13 = por %p506_p12, %p505_p11 }
 0x1d0   : > { %p508_p0 = pnand %p507_p13, %p501_p8 }
 0x1d2   : > { %511 = shalt.err (!%p508_p0)
}
 0x1d3   : > { %442 = dma.vmem_to_hbm [thread:$0]  (%p610_p5), %s648_s25, 128, %s646_s28, %s328_s29  }
 0x1d4 PF: > { %p448_p1 = scmp.ge.s32.totalorder %s546_s15, 2  ;;  %s353_s17 = sand.u32 1, %s534_s12  }
 0x1d5   : > { %s354_s19 = scalar_lea.sflag [#allocation3], %s353_s17 }
 0x1d6   : > { %p445_p2 = pnand %p448_p1, %p614_p6 }
 0x1d8   : > { %529 = dma.done.wait (!%p445_p2), %s354_s19, 128  }
 0x1d9   : > { %531 = vsyncadd (!%p445_p2), %s354_s19, 4294967168  ;;  %p13_p3 = scmp.ge.s32.totalorder %s597_s18, 4   ;;  %s695_s12 = smov %s538_s13 }
 0x1da   : > { %s696_s13 = smov %s542_s14  ;;  %s697_s14 = smov %s608_s21 }
 0x1db   : > { %s698_s15 = smov %s597_s18  ;;  %15 = sbr.rel (!%p13_p3) target bundleno = 3 (0x3), region = 67 }
 0x1e2   :  { %359 = vsyncpa [#allocation3], 1 }
 0x1e3   :  { %361 = vsyncpa [#allocation3 + $0x1], 1 }

</bundles_post_ra>
